<compile_context>
chip_gen: v7x
topology: tpu7x:2x2x1
jax: 0.10.0
libtpu: 0.0.40
codegen_flags: <defaults>
</compile_context>

<pallas_src>
import functools

import jax
import jax.numpy as jnp
from jax.experimental import pallas as pl
from jax.experimental.pallas import tpu as pltpu

EPS = 1e-5  # BatchNorm1d default eps


def _round_up(x, m):
    return (x + m - 1) // m * m


def _vmem_budget_bytes():
    """~3/4 of physical VMEM: 48 MiB on v7x, 96 MiB on v5e/v6e; safe fallback."""
    cap = 64 * 1024 * 1024
    try:
        info = pltpu.get_tpu_info()
        cap = int(getattr(info, "vmem_capacity_bytes", cap))
    except Exception:
        pass
    return (cap * 3) // 4


def _pick_tile(total, cap):
    """Largest multiple of 128 that divides `total` (itself a 128-multiple) and is <= cap."""
    t = max(128, (min(total, cap) // 128) * 128)
    while total % t != 0:
        t -= 128
    return t


def _tiling(B, K, N, x_bytes, w_bytes, vmem_budget):
    """Pick (TK, TN, x_whole) against an explicit resident-VMEM byte budget."""
    x_whole = 2 * B * K * x_bytes <= vmem_budget // 4
    tn_cap, tk_cap = 2048, 2048
    while True:
        tn = _pick_tile(N, tn_cap)
        tk = _pick_tile(K, tk_cap)
        need = (2 * B * (K if x_whole else tk) * x_bytes   # x stream / whole block
                + 2 * tk * tn * w_bytes                    # double-buffered W stream
                + 2 * B * tn * 4                           # f32 out block (= accumulator)
                + 2 * 3 * tn * 4)                          # packed per-feature params
        if need <= vmem_budget or (tn == 128 and tk == 128):
            break
        if tn >= tk:
            tn_cap = max(128, tn // 2)
        else:
            tk_cap = max(128, tk // 2)
    # v7x megacore: give the "parallel" j axis >= 2 tiles when the shape is big
    # enough to be compute-bound (otherwise both TCs just share the same HBM BW).
    if B >= 128 and N >= 256 and N // tn < 2:
        tn = _pick_tile(N, tn // 2)
    return tk, tn, x_whole


def _mix_bits(idx, seed):
    """Stateless lowbias32-style integer hash; idx/seed are uint32. Returns uint32 bits."""
    z = idx * jnp.uint32(0x9E3779B1) + seed
    z = (z ^ (z >> 16)) * jnp.uint32(0x85EBCA6B)
    z = (z ^ (z >> 13)) * jnp.uint32(0xC2B2AE35)
    return z ^ (z >> 16)


def _drop_threshold(rate):
    return jnp.uint32(min(int(float(rate) * 2**32), 2**32 - 1))


def down_block_kernel(seed_ref, x_ref, w_ref, p_ref, o_ref, *,
                      rate, n_total, tk, x_whole):
    j = pl.program_id(0)                 # out_dim tile ("parallel")
    k = pl.program_id(1)                 # in_dim (reduction) tile ("arbitrary")

    @pl.when(k == 0)
    def _init():
        o_ref[...] = jnp.zeros_like(o_ref)

    if x_whole:
        if x_ref.shape[1] == tk:         # single K tile: use the block as-is
            xk = x_ref[...]
        else:                            # aligned dynamic lane slice of the whole-x block
            xk = x_ref[:, pl.ds(pl.multiple_of(k * tk, tk), tk)]
    else:
        xk = x_ref[...]

    # ---- Linear (MXU, bf16 inputs), f32 accumulation directly into the
    #      VMEM-resident output block ----
    o_ref[...] += jnp.dot(xk, w_ref[...], preferred_element_type=jnp.float32)

    @pl.when(k == pl.num_programs(1) - 1)
    def _epilogue():
        p = p_ref[...]                   # [3, TN] f32: rows = bias, gamma, beta
        bias = p[0:1, :]
        gamma = p[1:2, :]
        beta = p[2:3, :]

        # ---- bias + ReLU (f32) ----
        h = jnp.maximum(o_ref[...] + bias, 0.0)

        # ---- BatchNorm1d (training-mode, biased batch stats), folded with the
        #      dropout 1/(1-p) into a single per-feature scale/shift ----
        mean = jnp.mean(h, axis=0, keepdims=True)
        var = jnp.mean(jnp.square(h - mean), axis=0, keepdims=True)
        inv = jax.lax.rsqrt(var + EPS)
        inv_keep = 1.0 / (1.0 - rate) if rate > 0.0 else 1.0
        scale = gamma * inv * inv_keep                     # [1, TN]
        shift = (beta - mean * gamma * inv) * inv_keep     # [1, TN]
        out = h * scale + shift                            # [B, TN]

        # ---- Dropout: integer-threshold compare on hashed global element index ----
        if rate > 0.0:
            bsz, tn = out.shape
            row = jax.lax.broadcasted_iota(jnp.int32, (bsz, tn), 0).astype(jnp.uint32)
            col = jax.lax.broadcasted_iota(jnp.int32, (bsz, tn), 1).astype(jnp.uint32)
            col = col + (j * tn).astype(jnp.uint32)        # global (padded) column
            idx = row * jnp.uint32(n_total) + col
            bits = _mix_bits(idx, seed_ref[0].astype(jnp.uint32))
            out = jnp.where(bits >= _drop_threshold(rate), out, 0.0)

        o_ref[...] = out.astype(o_ref.dtype)


def prepare_down_block_params(w, b, gamma, beta, *, matmul_dtype=jnp.bfloat16):
    """Init-time packing (done once, not per forward call).

    w: torch-layout [out_dim, in_dim].  Returns:
      w_padded : [K, N] in matmul dtype (K/N = dims padded to 128),
      params   : [3, N] f32 = [bias; gamma; beta].
    """
    out_dim, in_dim = w.shape
    K, N = _round_up(in_dim, 128), _round_up(out_dim, 128)
    w_padded = jnp.pad(w.T, ((0, K - in_dim), (0, N - out_dim))).astype(matmul_dtype)
    params = jnp.pad(jnp.stack([b, gamma, beta]).astype(jnp.float32),
                     ((0, 0), (0, N - out_dim)))
    return w_padded, params


def down_block(x, w_padded, params, *, out_dim, dropout_rate, seed=0,
               matmul_dtype=jnp.bfloat16):
    """x: [B, in_dim] f32; w_padded/params from prepare_down_block_params."""
    B, in_dim = x.shape
    K, N = w_padded.shape
    if in_dim != K:                                   # pad only when needed
        x = jnp.pad(x, ((0, 0), (0, K - in_dim)))
    xp = x.astype(matmul_dtype)

    budget = _vmem_budget_bytes()
    x_bytes = jnp.dtype(matmul_dtype).itemsize
    w_bytes = jnp.dtype(w_padded.dtype).itemsize
    TK, TN, x_whole = _tiling(B, K, N, x_bytes, w_bytes, budget)

    kernel = functools.partial(down_block_kernel, rate=float(dropout_rate),
                               n_total=N, tk=TK, x_whole=x_whole)

    if x_whole:
        # x DMA'd once (constant block index), sliced per-K-tile inside the kernel.
        x_spec = pl.BlockSpec((B, K), lambda j, k, seed: (0, 0))
    else:
        x_spec = pl.BlockSpec((B, TK), lambda j, k, seed: (0, k))

    out = pl.pallas_call(
        kernel,
        out_shape=jax.ShapeDtypeStruct((B, N), jnp.float32),
        grid_spec=pltpu.PrefetchScalarGridSpec(
            num_scalar_prefetch=1,                    # seed lives in SMEM
            grid=(N // TN, K // TK),                  # (out tiles, reduction tiles)
            in_specs=[
                x_spec,                                               # x
                pl.BlockSpec((TK, TN), lambda j, k, seed: (k, j)),    # W
                pl.BlockSpec((3, TN), lambda j, k, seed: (0, j)),     # [b; gamma; beta]
            ],
            out_specs=pl.BlockSpec((B, TN), lambda j, k, seed: (0, j)),
        ),
        compiler_params=pltpu.CompilerParams(
            dimension_semantics=("parallel", "arbitrary"),
            vmem_limit_bytes=int(budget),
        ),
    )(jnp.array([seed], dtype=jnp.int32), xp, w_padded, params)

    return out[:, :out_dim]


if __name__ == "__main__":
    B, in_dim, out_dim = 8, 32, 64
    dropout_rate = 0.1
    seed = 1234

    key = jax.random.PRNGKey(0)
    kx, kw, kb = jax.random.split(key, 3)

    x = jax.random.normal(kx, (B, in_dim), dtype=jnp.float32)

    # PyTorch nn.Linear default init: U(-1/sqrt(in_dim), 1/sqrt(in_dim))
    bound = 1.0 / (in_dim ** 0.5)
    w = jax.random.uniform(kw, (out_dim, in_dim), jnp.float32, -bound, bound)  # torch layout
    b = jax.random.uniform(kb, (out_dim,), jnp.float32, -bound, bound)
    gamma = jnp.ones((out_dim,), jnp.float32)   # BatchNorm1d weight
    beta = jnp.zeros((out_dim,), jnp.float32)   # BatchNorm1d bias

    # Init-time packing (one-off; not part of the per-call path).
    w_padded, params = prepare_down_block_params(w, b, gamma, beta)

    out = down_block(x, w_padded, params, out_dim=out_dim,
                     dropout_rate=dropout_rate, seed=seed)
    out = jax.block_until_ready(out)
    assert out.shape == (B, out_dim)

    # Pure-JAX reference using the same bf16 MXU inputs / f32 accumulation:
    # Linear -> ReLU -> training-mode BN, plus the *same* deterministic
    # hash-based dropout mask (fully reproducible outside the kernel).
    h = jnp.maximum(
        jnp.dot(x.astype(jnp.bfloat16), w.T.astype(jnp.bfloat16),
                preferred_element_type=jnp.float32) + b, 0.0)
    mean = jnp.mean(h, axis=0, keepdims=True)
    var = jnp.mean((h - mean) ** 2, axis=0, keepdims=True)
    bn = (h - mean) * jax.lax.rsqrt(var + EPS) * gamma + beta

    n_pad = _round_up(out_dim, 128)
    row = jnp.arange(B, dtype=jnp.uint32)[:, None]
    col = jnp.arange(out_dim, dtype=jnp.uint32)[None, :]
    bits = _mix_bits(row * jnp.uint32(n_pad) + col, jnp.uint32(seed))
    keep = bits >= _drop_threshold(dropout_rate)
    ref = jnp.where(keep, bn / (1.0 - dropout_rate), 0.0)

    assert bool(jnp.allclose(out, ref, atol=5e-3, rtol=5e-3)), "mismatch vs reference"
    assert 0.0 < float(keep.mean()) <= 1.0

    print("KERNEL_OK")
</pallas_src>

<mosaic_0001>
module attributes {stable_mosaic.version = 11 : i64} {
  func.func @down_block_kernel(%arg0: i32, %arg1: i32, %arg2: memref<1xi32, #tpu.memory_space<smem>>, %arg3: memref<8x128xbf16, #tpu.memory_space<vmem>>, %arg4: memref<128x128xbf16, #tpu.memory_space<vmem>>, %arg5: memref<3x128xf32, #tpu.memory_space<vmem>>, %arg6: memref<8x128xf32, #tpu.memory_space<vmem>>) attributes {dimension_semantics = [#tpu.dimension_semantics<parallel>, #tpu.dimension_semantics<arbitrary>], iteration_bounds = array<i64: 1, 1>, scalar_prefetch = 1 : i64, scratch_operands = 0 : i64, tpu.core_type = #tpu.core_type<tc>, window_params = [{pipeline_mode = #tpu.pipeline_mode<synchronous>, transform_indices = @transform_0, window_bounds = array<i64: 8, 128>}, {transform_indices = @transform_1, window_bounds = array<i64: 128, 128>}, {transform_indices = @transform_2, window_bounds = array<i64: 3, 128>}, {transform_indices = @transform_3, window_bounds = array<i64: 8, 128>}]} {
    %c0_i32 = arith.constant 0 : i32
    %0 = arith.cmpi eq, %arg1, %c0_i32 : i32
    %1 = arith.extui %0 : i1 to i32
    %c0_i32_0 = arith.constant 0 : i32
    %2 = arith.cmpi ne, %1, %c0_i32_0 : i32
    scf.if %2 {
      %cst_10 = arith.constant 0.000000e+00 : f32
      %12 = vector.broadcast %cst_10 : f32 to vector<8x128xf32>
      %c0_11 = arith.constant 0 : index
      %c0_12 = arith.constant 0 : index
      %13 = vector.load %arg6[%c0_11, %c0_12] : memref<8x128xf32, #tpu.memory_space<vmem>>, vector<8x128xf32>
      tpu.vector_store %arg6[%c0_11, %c0_12], %12 {strides = array<i32>} : memref<8x128xf32, #tpu.memory_space<vmem>>, vector<8x128xf32>,
    } else {
    }
    %c0 = arith.constant 0 : index
    %c0_1 = arith.constant 0 : index
    %3 = vector.load %arg3[%c0, %c0_1] : memref<8x128xbf16, #tpu.memory_space<vmem>>, vector<8x128xbf16>
    %c0_2 = arith.constant 0 : index
    %c0_3 = arith.constant 0 : index
    %4 = vector.load %arg6[%c0_2, %c0_3] : memref<8x128xf32, #tpu.memory_space<vmem>>, vector<8x128xf32>
    %c0_4 = arith.constant 0 : index
    %c0_5 = arith.constant 0 : index
    %5 = vector.load %arg4[%c0_4, %c0_5] : memref<128x128xbf16, #tpu.memory_space<vmem>>, vector<128x128xbf16>
    %cst = arith.constant dense<0.000000e+00> : vector<8x128xf32>
    %6 = tpu.matmul %3, %5, %cst {dimension_numbers = #tpu.dot_dimension_numbers<[1], [0], [0], [1], [0, 0, 1, 1], [], []>} : vector<8x128xbf16>, vector<128x128xbf16>, vector<8x128xf32> -> vector<8x128xf32>
    %7 = arith.addf %4, %6 : vector<8x128xf32>
    %c0_6 = arith.constant 0 : index
    %c0_7 = arith.constant 0 : index
    %8 = vector.load %arg6[%c0_6, %c0_7] : memref<8x128xf32, #tpu.memory_space<vmem>>, vector<8x128xf32>
    tpu.vector_store %arg6[%c0_6, %c0_7], %7 {strides = array<i32>} : memref<8x128xf32, #tpu.memory_space<vmem>>, vector<8x128xf32>,
    %c0_i32_8 = arith.constant 0 : i32
    %9 = arith.cmpi eq, %arg1, %c0_i32_8 : i32
    %10 = arith.extui %9 : i1 to i32
    %c0_i32_9 = arith.constant 0 : i32
    %11 = arith.cmpi ne, %10, %c0_i32_9 : i32
    scf.if %11 {
      %c0_10 = arith.constant 0 : index
      %c0_11 = arith.constant 0 : index
      %12 = vector.load %arg5[%c0_10, %c0_11] : memref<3x128xf32, #tpu.memory_space<vmem>>, vector<3x128xf32>
      %13 = vector.extract_strided_slice %12 {offsets = [0, 0], sizes = [1, 128], strides = [1, 1]} : vector<3x128xf32> to vector<1x128xf32>
      %14 = vector.extract_strided_slice %12 {offsets = [1, 0], sizes = [1, 128], strides = [1, 1]} : vector<3x128xf32> to vector<1x128xf32>
      %15 = vector.extract_strided_slice %12 {offsets = [2, 0], sizes = [1, 128], strides = [1, 1]} : vector<3x128xf32> to vector<1x128xf32>
      %c0_12 = arith.constant 0 : index
      %c0_13 = arith.constant 0 : index
      %16 = vector.load %arg6[%c0_12, %c0_13] : memref<8x128xf32, #tpu.memory_space<vmem>>, vector<8x128xf32>
      %17 = vector.broadcast %13 : vector<1x128xf32> to vector<8x128xf32>
      %18 = arith.addf %16, %17 : vector<8x128xf32>
      %cst_14 = arith.constant 0.000000e+00 : f32
      %19 = vector.broadcast %cst_14 : f32 to vector<8x128xf32>
      %20 = arith.maximumf %18, %19 : vector<8x128xf32>
      %cst_15 = arith.constant dense<0.000000e+00> : vector<128xf32>
      %21 = vector.multi_reduction <add>, %20, %cst_15 [0] : vector<8x128xf32> to vector<128xf32>
      %22 = vector.shape_cast %21 : vector<128xf32> to vector<1x128xf32>
      %cst_16 = arith.constant 8.000000e+00 : f32
      %23 = vector.broadcast %cst_16 : f32 to vector<1x128xf32>
      %24 = arith.divf %22, %23 : vector<1x128xf32>
      %25 = vector.broadcast %24 : vector<1x128xf32> to vector<8x128xf32>
      %26 = arith.subf %20, %25 : vector<8x128xf32>
      %27 = arith.mulf %26, %26 : vector<8x128xf32>
      %cst_17 = arith.constant dense<0.000000e+00> : vector<128xf32>
      %28 = vector.multi_reduction <add>, %27, %cst_17 [0] : vector<8x128xf32> to vector<128xf32>
      %29 = vector.shape_cast %28 : vector<128xf32> to vector<1x128xf32>
      %cst_18 = arith.constant 8.000000e+00 : f32
      %30 = vector.broadcast %cst_18 : f32 to vector<1x128xf32>
      %31 = arith.divf %29, %30 : vector<1x128xf32>
      %cst_19 = arith.constant 9.99999974E-6 : f32
      %32 = vector.broadcast %cst_19 : f32 to vector<1x128xf32>
      %33 = arith.addf %31, %32 : vector<1x128xf32>
      %34 = math.rsqrt %33 : vector<1x128xf32>
      %35 = arith.mulf %14, %34 : vector<1x128xf32>
      %cst_20 = arith.constant 1.11111116 : f32
      %36 = vector.broadcast %cst_20 : f32 to vector<1x128xf32>
      %37 = arith.mulf %35, %36 : vector<1x128xf32>
      %38 = arith.mulf %24, %14 : vector<1x128xf32>
      %39 = arith.mulf %38, %34 : vector<1x128xf32>
      %40 = arith.subf %15, %39 : vector<1x128xf32>
      %cst_21 = arith.constant 1.11111116 : f32
      %41 = vector.broadcast %cst_21 : f32 to vector<1x128xf32>
      %42 = arith.mulf %40, %41 : vector<1x128xf32>
      %43 = vector.broadcast %37 : vector<1x128xf32> to vector<8x128xf32>
      %44 = arith.mulf %20, %43 : vector<8x128xf32>
      %45 = vector.broadcast %42 : vector<1x128xf32> to vector<8x128xf32>
      %46 = arith.addf %44, %45 : vector<8x128xf32>
      %47 = tpu.iota {dimensions = array<i32: 0>} : vector<8x128xi32>
      %48 = tpu.iota {dimensions = array<i32: 1>} : vector<8x128xi32>
      %c128_i32 = arith.constant 128 : i32
      %49 = arith.muli %arg0, %c128_i32 : i32
      %50 = vector.broadcast %49 : i32 to vector<8x128xi32>
      %51 = arith.addi %48, %50 : vector<8x128xi32>
      %c128_i32_22 = arith.constant 128 : i32
      %52 = vector.broadcast %c128_i32_22 : i32 to vector<8x128xi32>
      %53 = arith.muli %47, %52 : vector<8x128xi32>
      %54 = arith.addi %53, %51 : vector<8x128xi32>
      %c0_23 = arith.constant 0 : index
      %55 = memref.load %arg2[%c0_23] : memref<1xi32, #tpu.memory_space<smem>>
      %c-1640531535_i32 = arith.constant -1640531535 : i32
      %56 = vector.broadcast %c-1640531535_i32 : i32 to vector<8x128xi32>
      %57 = arith.muli %54, %56 : vector<8x128xi32>
      %58 = vector.broadcast %55 : i32 to vector<8x128xi32>
      %59 = arith.addi %57, %58 : vector<8x128xi32>
      %c16_i32 = arith.constant 16 : i32
      %60 = vector.broadcast %c16_i32 : i32 to vector<8x128xi32>
      %61 = arith.shrui %59, %60 : vector<8x128xi32>
      %62 = arith.xori %59, %61 : vector<8x128xi32>
      %c-2048144789_i32 = arith.constant -2048144789 : i32
      %63 = vector.broadcast %c-2048144789_i32 : i32 to vector<8x128xi32>
      %64 = arith.muli %62, %63 : vector<8x128xi32>
      %c13_i32 = arith.constant 13 : i32
      %65 = vector.broadcast %c13_i32 : i32 to vector<8x128xi32>
      %66 = arith.shrui %64, %65 : vector<8x128xi32>
      %67 = arith.xori %64, %66 : vector<8x128xi32>
      %c-1028477387_i32 = arith.constant -1028477387 : i32
      %68 = vector.broadcast %c-1028477387_i32 : i32 to vector<8x128xi32>
      %69 = arith.muli %67, %68 : vector<8x128xi32>
      %c16_i32_24 = arith.constant 16 : i32
      %70 = vector.broadcast %c16_i32_24 : i32 to vector<8x128xi32>
      %71 = arith.shrui %69, %70 : vector<8x128xi32>
      %72 = arith.xori %69, %71 : vector<8x128xi32>
      %c429496729_i32 = arith.constant 429496729 : i32
      %73 = vector.broadcast %c429496729_i32 : i32 to vector<8x128xi32>
      %74 = arith.cmpi uge, %72, %73 : vector<8x128xi32>
      %cst_25 = arith.constant 0.000000e+00 : f32
      %75 = vector.broadcast %cst_25 : f32 to vector<8x128xf32>
      %76 = arith.select %74, %46, %75 : vector<8x128xi1>, vector<8x128xf32>
      %c0_26 = arith.constant 0 : index
      %c0_27 = arith.constant 0 : index
      %77 = vector.load %arg6[%c0_26, %c0_27] : memref<8x128xf32, #tpu.memory_space<vmem>>, vector<8x128xf32>
      tpu.vector_store %arg6[%c0_26, %c0_27], %76 {strides = array<i32>} : memref<8x128xf32, #tpu.memory_space<vmem>>, vector<8x128xf32>,
    } else {
    }
    return
  }
  func.func @transform_0(%arg0: i32, %arg1: i32, %arg2: memref<1xi32, #tpu.memory_space<smem>>) -> (i32, i32) {
    %c0_i32 = arith.constant 0 : i32
    %c0_i32_0 = arith.constant 0 : i32
    %c0_i32_1 = arith.constant 0 : i32
    return %c0_i32, %c0_i32_0 : i32, i32
  }
  func.func @transform_1(%arg0: i32, %arg1: i32, %arg2: memref<1xi32, #tpu.memory_space<smem>>) -> (i32, i32) {
    %c0_i32 = arith.constant 0 : i32
    return %arg1, %arg0 : i32, i32
  }
  func.func @transform_2(%arg0: i32, %arg1: i32, %arg2: memref<1xi32, #tpu.memory_space<smem>>) -> (i32, i32) {
    %c0_i32 = arith.constant 0 : i32
    %c0_i32_0 = arith.constant 0 : i32
    return %c0_i32, %arg0 : i32, i32
  }
  func.func @transform_3(%arg0: i32, %arg1: i32, %arg2: memref<1xi32, #tpu.memory_space<smem>>) -> (i32, i32) {
    %c0_i32 = arith.constant 0 : i32
    %c0_i32_0 = arith.constant 0 : i32
    return %c0_i32, %arg0 : i32, i32
  }
}

</mosaic_0001>

<bundles_post_ra>
// kernel: tpu_custom_call.1
= control target key start
LH: loop header
LB: loop body
LE: loop exit
PB: predicated region body
PF: predicated region fallthrough
CT: control target
= control target key end

     0   :  { %10 = vsyncpa [#allocation5], 0  ;;  %s453_s0 = inlined_call_operand.<no memory space> [shape: s32[1], index: 0, kind: input, shape index: {}]   ;;  %s454_s1 = inlined_call_operand.hbm [shape: bf16[8,128], index: 1, kind: input, shape index: {}]   ;;  %s455_s2 = inlined_call_operand.hbm [shape: bf16[128,128], index: 2, kind: input, shape index: {}]   ;;  %s456_s3 = inlined_call_operand.vmem [shape: f32[3,128], index: 3, kind: input, shape index: {}]   ;;  %s457_s4 = inlined_call_operand.hbm [shape: f32[8,128], index: 4, kind: output, shape index: {}]  }
   0x1   :  { %11 = vsyncpa [#allocation8], 0 }
   0x2   :  { %12 = vsyncpa [#allocation6], 0  ;;  %s372_s15 = smov [#allocation4]   ;;  %s373_s17 = smov [#allocation7]  }
   0x3   :  { %s19_s16 = sshll.u32 %s372_s15, 4  ;;  %s28_s18 = sshll.u32 %s373_s17, 4  ;;  %s20_s16 = int_to_ptr.vmem [resolvable:$true] %s19_s16  ;;  %s404_s18 = int_to_ptr.vmem [resolvable:$true] %s28_s18 }
   0x4   :  { %s300_s21 = scalar_lea.hbm %s454_s1, 64 }
   0x5   :  { %p301_p0 = scmp.ne.s32.totalorder %s454_s1, %s300_s21  ;;  %p304_p1 = scmp.lt.u32.totalorder %s300_s21, %s454_s1 }
   0x7   :  { %p306_p2 = pnand %p304_p1, %p301_p0 }
   0x9   :  { %309 = shalt.err (!%p306_p2)
}
   0xa   :  { %s310_s26 = scalar_lea.vmem %s20_s16, 64  ;;  %p315_p4 = scmp.lt.s32.totalorder %s20_s16, %s20_s16 }
   0xb   :  { %p311_p3 = scmp.ne.s32.totalorder %s20_s16, %s310_s26  ;;  %p316_p5 = scmp.lt.s32.totalorder %s310_s26, %s310_s26 }
   0xd   :  { %p317_p6 = por %p316_p5, %p315_p4 }
   0xf   :  { %p318_p7 = pnand %p317_p6, %p311_p3 }
  0x11   :  { %321 = shalt.err (!%p318_p7)
}
  0x12   :  { %22 = dma.hbm_to_vmem [thread:$0]  %s454_s1, 64, %s20_s16, [#allocation5]  }
  0x13   :  { %s322_s5 = scalar_lea.hbm %s455_s2, 1024 }
  0x14   :  { %p323_p8 = scmp.ne.s32.totalorder %s455_s2, %s322_s5  ;;  %p326_p9 = scmp.lt.u32.totalorder %s322_s5, %s455_s2 }
  0x16   :  { %p328_p10 = pnand %p326_p9, %p323_p8 }
  0x18   :  { %331 = shalt.err (!%p328_p10)
}
  0x19   :  { %s332_s10 = scalar_lea.vmem %s404_s18, 1024  ;;  %p337_p12 = scmp.lt.s32.totalorder %s404_s18, %s404_s18 }
  0x1a   :  { %p333_p11 = scmp.ne.s32.totalorder %s404_s18, %s332_s10  ;;  %p338_p13 = scmp.lt.s32.totalorder %s332_s10, %s332_s10 }
  0x1c   :  { %p339_p0 = por %p338_p13, %p337_p12 }
  0x1e   :  { %p340_p1 = pnand %p339_p0, %p333_p11 }
  0x20   :  { %343 = shalt.err (!%p340_p1)
}
  0x21   :  { %s374_s1 = smov 64   ;;  %s375_s11 = smov 4  }
  0x22   :  { %34 = dma.hbm_to_vmem [thread:$0]  %s455_s2, 1024, %s404_s18, [#allocation8], %s374_s1, %s374_s1, %s375_s11  }
  0x23   :  { %366 = dma.done.wait [#allocation5], 64  }
  0x24   :  { %367 = vsyncadd [#allocation5], 4294967232 }
  0x25   :  { %368 = dma.done.wait [#allocation8], 1024  }
  0x26   :  { %369 = vsyncadd [#allocation8], 4294966272  ;;  %v376_v0 = vmov 0.0   ;;  %vm377_vm0 = vmmov 0   ;;  %v290_v1 = vld [vmem:[#allocation7] sm:$0xff]   ;;  %v291_v2 = vld [vmem:[#allocation7 + $0x8] sm:$0xff]   ;;  %v162_v10 = vlaneseq  ;;  %v217_v33 = vstv %s453_s0 }
  0x27   :  { %263 = vmatprep.subr.bf16.mxu0 %v376_v0  ;;  %279 = vmatprep.mubr.msk.bf16.mxu0 %vm377_vm0, %v376_v0  ;;  %v292_v3 = vld [vmem:[#allocation7 + $0x10] sm:$0xff]   ;;  %v293_v4 = vld [vmem:[#allocation7 + $0x18] sm:$0xff]   ;;  %v294_v5 = vld [vmem:[#allocation7 + $0x20] sm:$0xff]   ;;  %s378_s0 = smov [#allocation9]  }
  0x28   :  { %264 = vmatpush3.bf16.msra.mxu0 %v290_v1  ;;  %v295_v6 = vld [vmem:[#allocation7 + $0x28] sm:$0xff]   ;;  %v296_v7 = vld [vmem:[#allocation7 + $0x30] sm:$0xff]   ;;  %v297_v8 = vld [vmem:[#allocation7 + $0x38] sm:$0xff]   ;;  %v163_v11 = vshrl.u32 %v162_v10, 7  ;;  %v209_v25 = vand.u32 127, %v162_v10  ;;  %s236_s16 = sshll.u32 %s378_s0, 4  ;;  %s237_s16 = int_to_ptr.vmem [resolvable:$true] %s236_s16 }
  0x29   :  { %265 = vmatprep.subr.bf16.mxu0 %v376_v0  ;;  %v49_v9 = vld [vmem:[#allocation4] sm:$0xf]  ;;  %s344_s17 = scalar_lea.vmem %s237_s16, 128  ;;  %p349_p3 = scmp.lt.s32.totalorder %s237_s16, %s237_s16 }
  0x2a   :  { %v164_v12 = vsub.s32 0, %v163_v11  ;;  %v160_v13 = vld [vmem:[%s456_s3] sm:$0x7]  ;;  %v213_v26 = vmul.u32 128, %v163_v11  ;;  %v198_v54 = vsub.s32 1, %v163_v11  ;;  %v203_v60 = vsub.s32 2, %v163_v11  ;;  %p345_p2 = scmp.ne.s32.totalorder %s237_s16, %s344_s17  ;;  %p350_p4 = scmp.lt.s32.totalorder %s344_s17, %s344_s17 }
  0x2c   :  { %266 = vmatpush3.bf16.msra.mxu0 %v291_v2  ;;  %v165_v14 = vrot.slane %v160_v13, %v164_v12  ;;  %v214_v29 = vadd.s32 %v213_v26, %v209_v25  ;;  %p351_p5 = por %p350_p4, %p349_p3 }
  0x2d   :  { %267 = vmatprep.subr.bf16.mxu0 %v376_v0 }
  0x2e   :  { %v216_v32 = vmul.u32 2654435761, %v214_v29  ;;  %p352_p6 = pnand %p351_p5, %p345_p2 }
  0x30   :  { %268 = vmatpush3.bf16.msra.mxu0 %v292_v3  ;;  %v218_v36 = vadd.s32 %v217_v33, %v216_v32 }
  0x31   :  { %269 = vmatprep.subr.bf16.mxu0 %v376_v0 }
  0x32   :  { %v219_v39 = vshrl.u32 %v218_v36, 16 }
  0x34   :  { %270 = vmatpush3.bf16.msra.mxu0 %v293_v4  ;;  %v220_v42 = vxor.u32 %v219_v39, %v218_v36 }
  0x35   :  { %271 = vmatprep.subr.bf16.mxu0 %v376_v0 }
  0x36   :  { %v221_v45 = vmul.u32 2246822507, %v220_v42 }
  0x38   :  { %272 = vmatpush3.bf16.msra.mxu0 %v294_v5  ;;  %v222_v47 = vshrl.u32 %v221_v45, 13 }
  0x39   :  { %273 = vmatprep.subr.bf16.mxu0 %v376_v0 }
  0x3a   :  { %v223_v48 = vxor.u32 %v222_v47, %v221_v45 }
  0x3c   :  { %274 = vmatpush3.bf16.msra.mxu0 %v295_v6  ;;  %v224_v49 = vmul.u32 3266489909, %v223_v48 }
  0x3d   :  { %275 = vmatprep.subr.bf16.mxu0 %v376_v0 }
  0x3e   :  { %v225_v55 = vshrl.u32 %v224_v49, 16 }
  0x40   :  { %276 = vmatpush3.bf16.msra.mxu0 %v296_v7  ;;  %v226_v61 = vxor.u32 %v225_v55, %v224_v49 }
  0x41   :  { %277 = vmatprep.subr.bf16.mxu0 %v376_v0 }
  0x42   :  { %vm227_vm1 = vcmp.ge.u32.totalorder %v226_v61, 429496729 }
  0x44   :  { %278 = vmatpush3.bf16.msra.mxu0 %v297_v8 }
  0x47   :  { %280 = vmatmul.mubr.bf16.vlgmr.msra.gmra.mrb[0].mxu0 %v49_v9 }
 0x11a   :  { %v149_v15 = vpop.f32.mrb[0].mxu0 }
 0x11b   :  { %v281_v16 = vpop.f32.mrb[1].mxu0  ;;  %v166_v19 = vadd.f32 %v165_v14, %v149_v15 }
 0x11c   :  { %v152_v17 = vpop.f32.mrb[2].mxu0 }
 0x11d   :  { %v282_v18 = vpop.f32.mrb[3].mxu0  ;;  %v167_v20 = vmax.f32 %v166_v19, 0.0 }
 0x11f   :  { %v168_v21 = vrot.slane %v167_v20, 4 }
 0x121   :  { %v169_v22 = vadd.f32 %v168_v21, %v167_v20 }
 0x123   :  { %v170_v23 = vrot.slane %v169_v22, 2 }
 0x125   :  { %v171_v24 = vadd.f32 %v170_v23, %v169_v22 }
 0x127   :  { %v172_v27 = vrot.slane %v171_v24, 1 }
 0x129   :  { %v173_v28 = vadd.f32 %v172_v27, %v171_v24 }
 0x12b   :  { %v175_v30 = vmul.f32 0.125, %v173_v28 }
 0x12d   :  { %v176_v31 = vsub.f32 %v167_v20, %v175_v30  ;;  %v189_v50 = vmul.f32 %v175_v30, %v160_v13 }
 0x12f   :  { %v177_v34 = vmul.f32 %v176_v31, %v176_v31 }
 0x131   :  { %v178_v35 = vrot.slane %v177_v34, 4 }
 0x133   :  { %v179_v37 = vadd.f32 %v178_v35, %v177_v34 }
 0x135   :  { %v180_v38 = vrot.slane %v179_v37, 2 }
 0x137   :  { %v181_v40 = vadd.f32 %v180_v38, %v179_v37 }
 0x139   :  { %v182_v41 = vrot.slane %v181_v40, 1 }
 0x13b   :  { %v183_v43 = vadd.f32 %v182_v41, %v181_v40 }
 0x13d   :  { %v184_v44 = vmul.f32 0.125, %v183_v43 }
 0x13f   :  { %v185_v46 = vadd.f32 1e-05, %v184_v44 }
 0x141   :  { %298 = vrsqrt.f32 %v185_v46 }
 0x14b   :  { %v299_v51 = vpop.eup %298 }
 0x14c   :  { %v187_v52 = vmul.f32 %v299_v51, %v160_v13  ;;  %v190_v53 = vmul.f32 %v299_v51, %v189_v50 }
 0x14e   :  { %v188_v56 = vmul.f32 1.1111112, %v187_v52  ;;  %v192_v57 = vrot.slane %v190_v53, 7 }
 0x150   :  { %v194_v58 = vsub.f32 %v160_v13, %v192_v57  ;;  %v199_v59 = vrot.slane %v188_v56, %v198_v54 }
 0x152   :  { %v195_v62 = vmul.f32 1.1111112, %v194_v58  ;;  %v200_v63 = vmul.f32 %v199_v59, %v167_v20 }
 0x154   :  { %v204_v0 = vrot.slane %v195_v62, %v203_v60 }
 0x156   :  { %v205_v1 = vadd.f32 %v204_v0, %v200_v63 }
 0x158   :  { %v228_v2 = vsel %vm227_vm1, %v205_v1, 0.0 }
 0x159   :  { %229 = vst [vmem:[#allocation9] sm:$0xff] %v228_v2 }
 0x15a   :  { %355 = shalt.err (!%p352_p6)
}
 0x15b   :  { %s356_s20 = scalar_lea.hbm %s457_s4, 128 }
 0x15c   :  { %p357_p7 = scmp.ne.s32.totalorder %s457_s4, %s356_s20  ;;  %p360_p8 = scmp.lt.u32.totalorder %s356_s20, %s457_s4 }
 0x15e   :  { %p362_p9 = pnand %p360_p8, %p357_p7 }
 0x160   :  { %365 = shalt.err (!%p362_p9)
}
 0x161   :  { %239 = dma.vmem_to_hbm [thread:$0]  %s237_s16, 128, %s457_s4, [#allocation6]  }
 0x162   :  { %370 = dma.done.wait [#allocation6], 128  }
 0x163   :  { %371 = vsyncadd [#allocation6], 4294967168 }
 0x164   :  { %243 = vsyncpa [#allocation5], 1 }
 0x165   :  { %244 = vsyncpa [#allocation8], 1 }
 0x166   :  { %245 = vsyncpa [#allocation6], 1 }

</bundles_post_ra>
